<compile_context>
chip_gen: v5e
topology: v5e:2x2
jax: 0.10.0
libtpu: 0.0.40
codegen_flags: <defaults>
</compile_context>

<pallas_src>
import math

import jax
import jax.numpy as jnp
from jax.experimental import pallas as pl
from jax.experimental.pallas import tpu as pltpu

_LANES = 128  # TPU lane width


def _round_up(n, m):
    return ((n + m - 1) // m) * m


def _disc_kernel(x_ref, w1_ref, w2_ref, aux_ref, b3_ref, out_ref):
    aux = aux_ref[...]          # (3, H): rows = [b1, b2, fc3-weight-row]
    b1 = aux[0:1, :]            # (1, H)
    b2 = aux[1:2, :]            # (1, H)
    w3_row = aux[2:3, :]        # (1, H)

    # fc1 + tanh (MXU)
    h1 = jnp.tanh(
        jnp.dot(x_ref[...], w1_ref[...], preferred_element_type=jnp.float32)
        + b1
    )
    # fc2 + tanh (MXU)
    h2 = jnp.tanh(
        jnp.dot(h1, w2_ref[...], preferred_element_type=jnp.float32)
        + b2
    )
    # fc3 (N=1): broadcast-multiply + lane reduction on VPU/XLU, bias from SMEM.
    logits = jnp.sum(h2 * w3_row, axis=-1, keepdims=True) + b3_ref[0]
    prob = jax.nn.sigmoid(logits)                       # (tile, 1)

    # Lane-dense store: replicate across all 128 lanes; wrapper slices col 0.
    out_ref[...] = jnp.broadcast_to(prob, out_ref.shape).astype(out_ref.dtype)


def pack_discriminator_params(params):
    """Pack params once for the kernel: w1/w2 as VMEM matrices, (b1,b2,w3^T)
    stacked into a single (3, H) VMEM array, b3 as a (1,) SMEM scalar."""
    aux = jnp.concatenate(
        [params["b1"], params["b2"], params["w3"].T], axis=0
    ).astype(jnp.float32)                                # (3, H)
    b3 = jnp.reshape(params["b3"], (1,)).astype(jnp.float32)
    return {
        "w1": params["w1"].astype(jnp.float32),
        "w2": params["w2"].astype(jnp.float32),
        "aux": aux,
        "b3": b3,
    }


def discriminator_forward(x, packed, *, block_b=512):
    """x: [B, num_inputs] f32. packed: output of pack_discriminator_params."""
    w1, w2, aux, b3 = packed["w1"], packed["w2"], packed["aux"], packed["b3"]
    B, num_inputs = x.shape

    # Batch tile: multiple of 8 sublanes, capped at block_b (VMEM-safe on
    # v5e/v6e/v7x: tiles here are only a few hundred KiB even double-buffered).
    bb = min(block_b, _round_up(B, 8))
    Bp = _round_up(B, bb)
    if Bp != B:
        x = jnp.pad(x, ((0, Bp - B), (0, 0)))

    out = pl.pallas_call(
        _disc_kernel,
        out_shape=jax.ShapeDtypeStruct((Bp, _LANES), jnp.float32),
        grid=(Bp // bb,),
        in_specs=[
            pl.BlockSpec((bb, num_inputs), lambda i: (i, 0)),    # activations
            pl.BlockSpec(w1.shape, lambda i: (0, 0)),            # resident w1
            pl.BlockSpec(w2.shape, lambda i: (0, 0)),            # resident w2
            pl.BlockSpec(aux.shape, lambda i: (0, 0)),           # b1/b2/w3 pack
            pl.BlockSpec(memory_space=pltpu.MemorySpace.SMEM),   # b3 scalar
        ],
        out_specs=pl.BlockSpec((bb, _LANES), lambda i: (i, 0)),
        compiler_params=pltpu.CompilerParams(
            dimension_semantics=("parallel",),
        ),
    )(x, w1, w2, aux, b3)

    return out[:B, :1]


def init_discriminator_params(key, num_inputs, hidden_size):
    """Deterministic init mimicking nn.Linear defaults:
    U(-1/sqrt(fan_in), 1/sqrt(fan_in)); fc3.weight *= 0.1, fc3.bias = 0."""
    k1, k2, k3, k4, k5, k6 = jax.random.split(key, 6)

    def lin(kw, kb, fan_in, fan_out):
        bound = 1.0 / math.sqrt(fan_in)
        # stored as [in, out] (transposed relative to PyTorch's [out, in])
        w = jax.random.uniform(kw, (fan_in, fan_out), jnp.float32, -bound, bound)
        b = jax.random.uniform(kb, (1, fan_out), jnp.float32, -bound, bound)
        return w, b

    w1, b1 = lin(k1, k2, num_inputs, hidden_size)
    w2, b2 = lin(k3, k4, hidden_size, hidden_size)
    w3, b3 = lin(k5, k6, hidden_size, 1)
    w3 = w3 * 0.1          # fc3.weight.data.mul_(0.1)
    b3 = b3 * 0.0          # fc3.bias.data.mul_(0.0)
    return {"w1": w1, "b1": b1, "w2": w2, "b2": b2, "w3": w3, "b3": b3}


def _reference_forward(x, p):
    h1 = jnp.tanh(x @ p["w1"] + p["b1"])
    h2 = jnp.tanh(h1 @ p["w2"] + p["b2"])
    return jax.nn.sigmoid(h2 @ p["w3"] + p["b3"])


if __name__ == "__main__":
    key = jax.random.PRNGKey(0)
    k_param, k_x, k_x2 = jax.random.split(key, 3)

    batch = 4
    num_inputs = 8      # e.g. state_dim + action_dim
    hidden_size = 32    # args.hidden_size

    params = init_discriminator_params(k_param, num_inputs, hidden_size)
    packed = pack_discriminator_params(params)

    # Small batch (matches the module's typical minibatch use).
    x = jax.random.normal(k_x, (batch, num_inputs), jnp.float32)
    prob = jax.block_until_ready(discriminator_forward(x, packed))
    ref = _reference_forward(x, params)
    assert prob.shape == (batch, 1)
    assert jnp.allclose(prob, ref, atol=2e-5, rtol=2e-5)

    # Larger batch to exercise the multi-step grid, resident weights, and the
    # row-padding path.
    x_big = jax.random.normal(k_x2, (600, num_inputs), jnp.float32)
    prob_big = jax.block_until_ready(discriminator_forward(x_big, packed))
    ref_big = _reference_forward(x_big, params)
    assert prob_big.shape == (600, 1)
    assert jnp.allclose(prob_big, ref_big, atol=2e-5, rtol=2e-5)

    print("KERNEL_OK")
</pallas_src>

<mosaic_0001>
module attributes {stable_mosaic.version = 11 : i64} {
  func.func @_disc_kernel(%arg0: i32, %arg1: memref<8x8xf32, #tpu.memory_space<vmem>>, %arg2: memref<8x32xf32, #tpu.memory_space<vmem>>, %arg3: memref<32x32xf32, #tpu.memory_space<vmem>>, %arg4: memref<3x32xf32, #tpu.memory_space<vmem>>, %arg5: memref<1xf32, #tpu.memory_space<smem>>, %arg6: memref<8x128xf32, #tpu.memory_space<vmem>>) attributes {dimension_semantics = [#tpu.dimension_semantics<parallel>], iteration_bounds = array<i64: 1>, scalar_prefetch = 0 : i64, scratch_operands = 0 : i64, tpu.core_type = #tpu.core_type<tc>, window_params = [{transform_indices = @transform_0, window_bounds = array<i64: 8, 8>}, {pipeline_mode = #tpu.pipeline_mode<synchronous>, transform_indices = @transform_1, window_bounds = array<i64: 8, 32>}, {pipeline_mode = #tpu.pipeline_mode<synchronous>, transform_indices = @transform_2, window_bounds = array<i64: 32, 32>}, {pipeline_mode = #tpu.pipeline_mode<synchronous>, transform_indices = @transform_3, window_bounds = array<i64: 3, 32>}, {transform_indices = @transform_4, window_bounds = array<i64: 1>}, {transform_indices = @transform_5, window_bounds = array<i64: 8, 128>}]} {
    %c0 = arith.constant 0 : index
    %c0_0 = arith.constant 0 : index
    %0 = vector.load %arg4[%c0, %c0_0] : memref<3x32xf32, #tpu.memory_space<vmem>>, vector<3x32xf32>
    %1 = vector.extract_strided_slice %0 {offsets = [0, 0], sizes = [1, 32], strides = [1, 1]} : vector<3x32xf32> to vector<1x32xf32>
    %2 = vector.extract_strided_slice %0 {offsets = [1, 0], sizes = [1, 32], strides = [1, 1]} : vector<3x32xf32> to vector<1x32xf32>
    %3 = vector.extract_strided_slice %0 {offsets = [2, 0], sizes = [1, 32], strides = [1, 1]} : vector<3x32xf32> to vector<1x32xf32>
    %c0_1 = arith.constant 0 : index
    %c0_2 = arith.constant 0 : index
    %4 = vector.load %arg1[%c0_1, %c0_2] : memref<8x8xf32, #tpu.memory_space<vmem>>, vector<8x8xf32>
    %c0_3 = arith.constant 0 : index
    %c0_4 = arith.constant 0 : index
    %5 = vector.load %arg2[%c0_3, %c0_4] : memref<8x32xf32, #tpu.memory_space<vmem>>, vector<8x32xf32>
    %cst = arith.constant dense<0.000000e+00> : vector<8x32xf32>
    %6 = tpu.matmul %4, %5, %cst {dimension_numbers = #tpu.dot_dimension_numbers<[1], [0], [0], [1], [0, 0, 1, 1], [], []>} : vector<8x8xf32>, vector<8x32xf32>, vector<8x32xf32> -> vector<8x32xf32>
    %7 = vector.broadcast %1 : vector<1x32xf32> to vector<8x32xf32>
    %8 = arith.addf %6, %7 : vector<8x32xf32>
    %9 = math.tanh %8 : vector<8x32xf32>
    %c0_5 = arith.constant 0 : index
    %c0_6 = arith.constant 0 : index
    %10 = vector.load %arg3[%c0_5, %c0_6] : memref<32x32xf32, #tpu.memory_space<vmem>>, vector<32x32xf32>
    %cst_7 = arith.constant dense<0.000000e+00> : vector<8x32xf32>
    %11 = tpu.matmul %9, %10, %cst_7 {dimension_numbers = #tpu.dot_dimension_numbers<[1], [0], [0], [1], [0, 0, 1, 1], [], []>} : vector<8x32xf32>, vector<32x32xf32>, vector<8x32xf32> -> vector<8x32xf32>
    %12 = vector.broadcast %2 : vector<1x32xf32> to vector<8x32xf32>
    %13 = arith.addf %11, %12 : vector<8x32xf32>
    %14 = math.tanh %13 : vector<8x32xf32>
    %15 = vector.broadcast %3 : vector<1x32xf32> to vector<8x32xf32>
    %16 = arith.mulf %14, %15 : vector<8x32xf32>
    %cst_8 = arith.constant dense<0.000000e+00> : vector<8xf32>
    %17 = vector.multi_reduction <add>, %16, %cst_8 [1] : vector<8x32xf32> to vector<8xf32>
    %18 = vector.shape_cast %17 : vector<8xf32> to vector<8x1xf32>
    %c0_9 = arith.constant 0 : index
    %19 = memref.load %arg5[%c0_9] : memref<1xf32, #tpu.memory_space<smem>>
    %20 = vector.broadcast %19 : f32 to vector<8x1xf32>
    %21 = arith.addf %18, %20 : vector<8x1xf32>
    %22 = arith.negf %21 : vector<8x1xf32>
    %23 = math.exp %22 : vector<8x1xf32>
    %cst_10 = arith.constant 1.000000e+00 : f32
    %24 = vector.broadcast %cst_10 : f32 to vector<8x1xf32>
    %25 = arith.addf %24, %23 : vector<8x1xf32>
    %26 = arith.divf %24, %25 : vector<8x1xf32>
    %27 = vector.shape_cast %26 : vector<8x1xf32> to vector<8x1xf32>
    %28 = vector.broadcast %27 : vector<8x1xf32> to vector<8x128xf32>
    %c0_11 = arith.constant 0 : index
    %c0_12 = arith.constant 0 : index
    %29 = vector.load %arg6[%c0_11, %c0_12] : memref<8x128xf32, #tpu.memory_space<vmem>>, vector<8x128xf32>
    tpu.vector_store %arg6[%c0_11, %c0_12], %28 {strides = array<i32>} : memref<8x128xf32, #tpu.memory_space<vmem>>, vector<8x128xf32>,
    return
  }
  func.func @transform_0(%arg0: i32) -> (i32, i32) {
    %c0_i32 = arith.constant 0 : i32
    %c0_i32_0 = arith.constant 0 : i32
    return %arg0, %c0_i32 : i32, i32
  }
  func.func @transform_1(%arg0: i32) -> (i32, i32) {
    %c0_i32 = arith.constant 0 : i32
    %c0_i32_0 = arith.constant 0 : i32
    %c0_i32_1 = arith.constant 0 : i32
    return %c0_i32, %c0_i32_0 : i32, i32
  }
  func.func @transform_2(%arg0: i32) -> (i32, i32) {
    %c0_i32 = arith.constant 0 : i32
    %c0_i32_0 = arith.constant 0 : i32
    %c0_i32_1 = arith.constant 0 : i32
    return %c0_i32, %c0_i32_0 : i32, i32
  }
  func.func @transform_3(%arg0: i32) -> (i32, i32) {
    %c0_i32 = arith.constant 0 : i32
    %c0_i32_0 = arith.constant 0 : i32
    %c0_i32_1 = arith.constant 0 : i32
    return %c0_i32, %c0_i32_0 : i32, i32
  }
  func.func @transform_4(%arg0: i32) -> i32 {
    %c0_i32 = arith.constant 0 : i32
    %c0_i32_0 = arith.constant 0 : i32
    return %c0_i32 : i32
  }
  func.func @transform_5(%arg0: i32) -> (i32, i32) {
    %c0_i32 = arith.constant 0 : i32
    %c0_i32_0 = arith.constant 0 : i32
    return %arg0, %c0_i32 : i32, i32
  }
}

</mosaic_0001>

<bundles_post_ra>
// kernel: tpu_custom_call.1
= control target key start
LH: loop header
LB: loop body
LE: loop exit
PB: predicated region body
PF: predicated region fallthrough
CT: control target
= control target key end

     0   :  { %11 = vsyncpa [#allocation4], 0  ;;  %s343_s0 = inlined_call_operand.hbm [shape: f32[8,8], index: 0, kind: input, shape index: {}]   ;;  %s344_s1 = inlined_call_operand.hbm [shape: f32[8,32], index: 1, kind: input, shape index: {}]   ;;  %s345_s2 = inlined_call_operand.hbm [shape: f32[32,32], index: 2, kind: input, shape index: {}]   ;;  %s346_s3 = inlined_call_operand.vmem [shape: f32[3,32], index: 3, kind: input, shape index: {}]   ;;  %s347_s4 = inlined_call_operand.<no memory space> [shape: f32[1], index: 4, kind: input, shape index: {}]   ;;  %s348_s5 = inlined_call_operand.hbm [shape: f32[8,128], index: 5, kind: output, shape index: {}]  }
   0x1   :  { %12 = vsyncpa [#allocation7], 0  ;;  %s30_s20 = sshll.u32 %s344_s1, 4  ;;  %s31_s20 = int_to_ptr.hbm [resolvable:$true] %s30_s20 }
   0x2   :  { %13 = vsyncpa [#allocation5], 0  ;;  %s289_s21 = smov [#allocation6]   ;;  %s19_s25 = sshll.u32 %s343_s0, 4  ;;  %s20_s25 = int_to_ptr.hbm [resolvable:$true] %s19_s25 }
   0x3   :  { %s32_s22 = sshll.u32 %s289_s21, 4  ;;  %s290_s26 = smov [#allocation3]   ;;  %s33_s22 = int_to_ptr.vmem [resolvable:$true] %s32_s22 }
   0x4   :  { %35 = dma.hbm_to_vmem [thread:$0]  %s31_s20, 128, %s33_s22, [#allocation7]  }
   0x5   :  { %s21_s27 = sshll.u32 %s290_s26, 4  ;;  %s40_s30 = sshll.u32 %s345_s2, 4  ;;  %s22_s27 = int_to_ptr.vmem [resolvable:$true] %s21_s27  ;;  %s41_s30 = int_to_ptr.hbm [resolvable:$true] %s40_s30 }
   0x6   :  { %24 = dma.hbm_to_vmem [thread:$0]  %s20_s25, 128, %s22_s27, [#allocation4]  }
   0x7   :  { %s291_s1 = smov [#allocation8]   ;;  %s292_s7 = smov 128  }
   0x8   :  { %s42_s6 = sshll.u32 %s291_s1, 4  ;;  %s293_s8 = smov 8   ;;  %s43_s6 = int_to_ptr.vmem [resolvable:$true] %s42_s6 }
   0x9   :  { %48 = dma.hbm_to_vmem [thread:$0]  %s41_s30, 512, %s43_s6, [#allocation7], %s292_s7, %s292_s7, %s293_s8  }
   0xa   :  { %283 = dma.done.wait [#allocation4], 128  }
   0xb   :  { %284 = vsyncadd [#allocation4], 4294967168 }
   0xc   :  { %285 = dma.done.wait [#allocation7], 640  }
   0xd   :  { %286 = vsyncadd [#allocation7], 4294966656  ;;  %vm69_vm0 = vcmask 64512   ;;  %v67_v0 = vld [vmem:[#allocation6] sm:$0xff]  ;;  %v66_v1 = vld [vmem:[#allocation3] sm:$0xff]  ;;  %vm99_vm1 = vcmask 261120   ;;  %v130_v18 = vstv %s347_s4 }
   0xe   :  { %88 = vmatpush.msra.mxu0 %v67_v0  ;;  %v97_v2 = vld [vmem:[#allocation8 + $0x18] sm:$0xff]  ;;  %v96_v3 = vld [vmem:[#allocation8 + $0x10] sm:$0xff]  ;;  %v95_v4 = vld [vmem:[#allocation8 + $0x8] sm:$0xff]  ;;  %s159_s4 = sshll.u32 %s348_s5, 4  ;;  %s160_s4 = int_to_ptr.hbm [resolvable:$true] %s159_s4 }
   0xf   :  { %170 = vmatmul.msk.f32.vlgmr.msra.gmra.mxu0 %vm69_vm0, %v66_v1  ;;  %115 = vmatpush.msra.mxu1 %v97_v2  ;;  %v94_v5 = vld [vmem:[#allocation8] sm:$0xff]  ;;  %v65_v6 = vld [vmem:[%s346_s3] sm:$0x7]  ;;  %s294_s3 = smov [#allocation9]  }
  0x10   :  { %v68_v7 = vperm.slane %v65_v6, 0  ;;  %v98_v11 = vperm.slane %v65_v6, 1  ;;  %v124_v14 = vperm.slane %v65_v6, 2  ;;  %s157_s11 = sshll.u32 %s294_s3, 4  ;;  %s158_s11 = int_to_ptr.vmem [resolvable:$true] %s157_s11 }
  0x11   :  { %116 = vmatpush.msra.mxu1 %v96_v3 }
  0x13   :  { %117 = vmatpush.msra.mxu1 %v95_v4 }
  0x15   :  { %118 = vmatpush.msra.mxu1 %v94_v5 }
  0x8c   :  { %v90_v8 = vpop.f32.mrf.mxu0 }
  0x8d   :  { %v91_v9 = vadd.f32 %v90_v8, %v68_v7 }
  0x8f   :  { %179 = vtanh.f32 %v91_v9 }
  0x95   :  { %v180_v10 = vpop.eup %179 }
  0x96   :  { %171 = vmatmul.msk.f32.vlgmr.msra.gmra.mxu1 %vm99_vm1, %v180_v10 }
 0x113   :  { %v120_v12 = vpop.f32.mrf.mxu1 }
 0x114   :  { %v121_v13 = vadd.f32 %v120_v12, %v98_v11 }
 0x116   :  { %181 = vtanh.f32 %v121_v13 }
 0x11c   :  { %v182_v15 = vpop.eup %181 }
 0x11d   :  { %v125_v16 = vmul.f32 %v182_v15, %v124_v14 }
 0x11f   :  { %v126_v17 = vsel %vm99_vm1, %v125_v16, 0.0 }
 0x120   :  { %127 = vadd.xlane.f32.xlu0 %v126_v17 }
 0x193   :  { %v128_v19 = vpop.xlane.xlu0 %127 }
 0x194   :  { %v131_v20 = vadd.f32 %v130_v18, %v128_v19 }
 0x196   :  { %v172_v21 = vmul.f32 -1.442695, %v131_v20 }
 0x198   :  { %183 = vpow2.f32 %v172_v21 }
 0x19e   :  { %v184_v22 = vpop.eup %183 }
 0x19f   :  { %v135_v23 = vadd.f32 1.0, %v184_v22 }
 0x1a1   :  { %185 = vrcp.f32 %v135_v23  ;;  %v147_v27 = vand.u32 2147483648, %v135_v23  ;;  %v145_v29 = vand.u32 2147483647, %v135_v23  ;;  %vm141_vm3 = vweird.f32 %v135_v23 }
 0x1a3   :  { %v148_v31 = vor.u32 1.1754944e-38, %v147_v27  ;;  %vm146_vm5 = vcmp.eq.f32.partialorder %v145_v29, 8.507059e+37 }
 0x1a7   :  { %v186_v24 = vpop.eup %185 }
 0x1a8   :  { %v137_v25 = vmul.f32 %v186_v24, %v135_v23  ;;  %vm142_vm2 = vweird.f32 %v186_v24 }
 0x1a9   :  { %vm143_vm4 = vmor %vm141_vm3, %vm142_vm2 }
 0x1aa   :  { %v138_v26 = vsub.f32 1.0, %v137_v25 }
 0x1ac   :  { %v139_v28 = vmul.f32 %v186_v24, %v138_v26 }
 0x1ae   :  { %v140_v30 = vadd.f32 %v186_v24, %v139_v28 }
 0x1b0   :  { %v144_v32 = vsel %vm143_vm4, %v186_v24, %v140_v30 }
 0x1b1   :  { %v149_v33 = vsel %vm146_vm5, %v148_v31, %v144_v32 }
 0x1b2   :  { %151 = vst [vmem:[#allocation9] sm:$0xff] %v149_v33 }
 0x1b3   :  { %162 = dma.vmem_to_hbm [thread:$0]  %s158_s11, 128, %s160_s4, [#allocation5]  }
 0x1b4   :  { %287 = dma.done.wait [#allocation5], 128  }
 0x1b5   :  { %288 = vsyncadd [#allocation5], 4294967168 }
 0x1b6   :  { %167 = vsyncpa [#allocation4], 1 }
 0x1b7   :  { %168 = vsyncpa [#allocation7], 1 }
 0x1b8   :  { %169 = vsyncpa [#allocation5], 1 }

</bundles_post_ra>
